<compile_context>
chip_gen: v7x
topology: tpu7x:2x2x1
jax: 0.10.0
libtpu: 0.0.40
codegen_flags: <defaults>
</compile_context>

<pallas_src>
import functools
import math

import jax
import jax.numpy as jnp
from jax.experimental import pallas as pl
from jax.experimental.pallas import tpu as pltpu


# ---------------------------------------------------------------------------
# Small helpers
# ---------------------------------------------------------------------------
def _round_up(x, m):
    return ((x + m - 1) // m) * m


def _pick_tile(dim, preferred=(512, 256, 128)):
    """Largest preferred tile that divides `dim`; otherwise use the full dim."""
    for t in preferred:
        if dim % t == 0:
            return t
    return dim


# ---------------------------------------------------------------------------
# Pallas kernel: fused patch-projection matmul (bf16 -> f32 acc) + PE add
# ---------------------------------------------------------------------------
def _patch_embed_pe_kernel(x_ref, w_ref, pe_ref, o_ref):
    # x_ref : (1, tN, K)  bf16 patch vectors for one (batch, N-tile)
    # w_ref : (K, tE)     bf16 projection-weight tile (constant over b, i)
    # pe_ref: (tN, tE)    f32 positional-encoding tile (constant over b)
    # o_ref : (1, tN, tE) f32 output tile
    proj = jnp.dot(x_ref[0], w_ref[...], preferred_element_type=jnp.float32)
    o_ref[0] = (proj + pe_ref[...]).astype(o_ref.dtype)


def patch_embed_with_pe_pallas(patches, w, pe):
    """patches: (B, N_pad, K_pad) bf16, w: (K_pad, E_pad) bf16, pe: (N_pad, E_pad) f32
    -> (B, N_pad, E_pad) f32."""
    B, N, K = patches.shape
    E = w.shape[1]
    tN = _pick_tile(N)
    tE = _pick_tile(E)
    nN, nE = N // tN, E // tE

    # VMEM budget: double-buffered x/out tiles + weight + PE tile, with headroom.
    tile_bytes = 2 * (tN * K * 2 + K * tE * 2 + tN * tE * 4 + tN * tE * 4)
    vmem_limit = int(min(max(3 * tile_bytes, 32 << 20), 64 << 20))

    return pl.pallas_call(
        _patch_embed_pe_kernel,
        out_shape=jax.ShapeDtypeStruct((B, N, E), jnp.float32),
        grid_spec=pltpu.PrefetchScalarGridSpec(
            num_scalar_prefetch=0,
            grid=(B, nN, nE),
            in_specs=[
                pl.BlockSpec((1, tN, K), lambda b, i, j: (b, i, 0)),
                pl.BlockSpec((K, tE), lambda b, i, j: (0, j)),
                pl.BlockSpec((tN, tE), lambda b, i, j: (i, j)),
            ],
            out_specs=pl.BlockSpec((1, tN, tE), lambda b, i, j: (b, i, j)),
        ),
        compiler_params=pltpu.CompilerParams(
            dimension_semantics=("parallel", "parallel", "parallel"),
            vmem_limit_bytes=vmem_limit,
        ),
    )(patches, w, pe)


# ---------------------------------------------------------------------------
# Plain-JAX glue: patch extraction, one-time param prep, sinusoidal PE table
# ---------------------------------------------------------------------------
def extract_patches_nchw(x, patch_size):
    """x: (B, C, H, W) -> (B, num_patches, C*ph*pw), matching Conv2d(k=stride=patch)."""
    ph, pw = patch_size
    B, C, H, W = x.shape
    gh, gw = H // ph, W // pw
    xp = x.reshape(B, C, gh, ph, gw, pw)
    xp = jnp.transpose(xp, (0, 2, 4, 1, 3, 5))      # (B, gh, gw, C, ph, pw)
    return xp.reshape(B, gh * gw, C * ph * pw)


def sinusoidal_pe(max_len, d_model):
    """Standard transformer sinusoidal positional encoding, shape (max_len, d_model)."""
    position = jnp.arange(max_len, dtype=jnp.float32)[:, None]
    div_term = jnp.exp(
        jnp.arange(0, d_model, 2, dtype=jnp.float32)
        * (-math.log(10000.0) / d_model)
    )
    pe = jnp.zeros((max_len, d_model), dtype=jnp.float32)
    pe = pe.at[:, 0::2].set(jnp.sin(position * div_term))
    pe = pe.at[:, 1::2].set(jnp.cos(position * div_term))
    return pe


def prepare_params(conv_weight, pe_table):
    """One-time prep: conv weight (E,C,ph,pw) -> padded bf16 (K_pad, E_pad);
    PE table padded in E to E_pad (f32). Done once, outside the per-call path."""
    E = conv_weight.shape[0]
    K = conv_weight.reshape(E, -1).shape[1]
    K_pad = _round_up(K, 128)
    E_pad = _round_up(E, 128)
    w = conv_weight.reshape(E, K).T.astype(jnp.bfloat16)             # (K, E)
    w = jnp.pad(w, ((0, K_pad - K), (0, E_pad - E)))
    pe = jnp.pad(pe_table.astype(jnp.float32), ((0, 0), (0, E_pad - E)))
    return w, pe, E


@functools.partial(jax.jit, static_argnames=("patch_size", "embed_dim"))
def patch_embedding_with_pe(x, w_pad, pe_pad, *, patch_size, embed_dim):
    """Forward pass matching the PyTorch module (use_learnable=False).

    x:       (B, C, H, W) float32, NCHW
    w_pad:   (K_pad, E_pad) bfloat16 prepared projection weight
    pe_pad:  (max_num_patch, E_pad) float32 prepared PE table
    returns: (B, num_patches, embed_dim) float32
    """
    ph, pw = patch_size
    B, C, H, W = x.shape
    N = (H // ph) * (W // pw)
    K = C * ph * pw
    K_pad, E_pad = w_pad.shape

    patches = extract_patches_nchw(x, patch_size).astype(jnp.bfloat16)  # (B,N,K)

    if N <= 128:
        N_pad = _round_up(N, 8)
    else:
        N_pad = _round_up(N, 128)
    patches = jnp.pad(patches, ((0, 0), (0, N_pad - N), (0, K_pad - K)))
    pe = jnp.pad(pe_pad[:N], ((0, N_pad - N), (0, 0)))                  # (N_pad,E_pad)

    out_pad = patch_embed_with_pe_pallas(patches, w_pad, pe)            # (B,N_pad,E_pad)
    return out_pad[:, :N, :embed_dim]


# ---------------------------------------------------------------------------
# Pure-JAX reference for verification (full f32)
# ---------------------------------------------------------------------------
def reference_forward(x, conv_weight, pe_table, patch_size):
    E = conv_weight.shape[0]
    patches = extract_patches_nchw(x, patch_size)
    N = patches.shape[1]
    w = conv_weight.reshape(E, -1).T
    return patches @ w + pe_table[:N][None]


if __name__ == "__main__":
    # Small shapes consistent with the module:
    # batch=2, channels=4, spatial=16x16, patch=4 -> 16 patches, embed_dim=32
    B, C, H, W = 2, 4, 16, 16
    patch_size = (4, 4)
    embed_dim = 32
    max_num_patch = 64

    key = jax.random.PRNGKey(0)
    kx, kw = jax.random.split(key)
    x = jax.random.normal(kx, (B, C, H, W), dtype=jnp.float32)
    # Deterministic synthetic Conv2d weight (E, C, ph, pw), bias=False.
    conv_weight = (
        jax.random.normal(kw, (embed_dim, C, *patch_size), dtype=jnp.float32) * 0.02
    )
    pe_table = sinusoidal_pe(max_num_patch, embed_dim)

    w_pad, pe_pad, _ = prepare_params(conv_weight, pe_table)
    out = patch_embedding_with_pe(
        x, w_pad, pe_pad, patch_size=patch_size, embed_dim=embed_dim
    )
    out = jax.block_until_ready(out)

    ref = reference_forward(x, conv_weight, pe_table, patch_size)
    assert out.shape == (B, (H // patch_size[0]) * (W // patch_size[1]), embed_dim)
    # bf16 MXU operands with f32 accumulation -> loosened tolerance vs f32 ref.
    assert jnp.allclose(out, ref, atol=1e-2, rtol=1e-2)

    print("KERNEL_OK")
</pallas_src>

<mosaic_0001>
module attributes {stable_mosaic.version = 11 : i64} {
  func.func @_patch_embed_pe_kernel(%arg0: i32, %arg1: i32, %arg2: i32, %arg3: memref<1x16x128xbf16, #tpu.memory_space<vmem>>, %arg4: memref<128x128xbf16, #tpu.memory_space<vmem>>, %arg5: memref<16x128xf32, #tpu.memory_space<vmem>>, %arg6: memref<1x16x128xf32, #tpu.memory_space<vmem>>) attributes {dimension_semantics = [#tpu.dimension_semantics<parallel>, #tpu.dimension_semantics<parallel>, #tpu.dimension_semantics<parallel>], iteration_bounds = array<i64: 2, 1, 1>, scalar_prefetch = 0 : i64, scratch_operands = 0 : i64, tpu.core_type = #tpu.core_type<tc>, window_params = [{transform_indices = @transform_0, window_bounds = array<i64: 1, 16, 128>}, {transform_indices = @transform_1, window_bounds = array<i64: 128, 128>}, {transform_indices = @transform_2, window_bounds = array<i64: 16, 128>}, {transform_indices = @transform_3, window_bounds = array<i64: 1, 16, 128>}]} {
    %c0 = arith.constant 0 : index
    %c0_0 = arith.constant 0 : index
    %c0_1 = arith.constant 0 : index
    %0 = vector.load %arg3[%c0, %c0_0, %c0_1] : memref<1x16x128xbf16, #tpu.memory_space<vmem>>, vector<1x16x128xbf16>
    %1 = vector.shape_cast %0 : vector<1x16x128xbf16> to vector<16x128xbf16>
    %c0_2 = arith.constant 0 : index
    %c0_3 = arith.constant 0 : index
    %2 = vector.load %arg4[%c0_2, %c0_3] : memref<128x128xbf16, #tpu.memory_space<vmem>>, vector<128x128xbf16>
    %cst = arith.constant dense<0.000000e+00> : vector<16x128xf32>
    %3 = tpu.matmul %1, %2, %cst {dimension_numbers = #tpu.dot_dimension_numbers<[1], [0], [0], [1], [0, 0, 1, 1], [], []>} : vector<16x128xbf16>, vector<128x128xbf16>, vector<16x128xf32> -> vector<16x128xf32>
    %c0_4 = arith.constant 0 : index
    %c0_5 = arith.constant 0 : index
    %4 = vector.load %arg5[%c0_4, %c0_5] : memref<16x128xf32, #tpu.memory_space<vmem>>, vector<16x128xf32>
    %5 = arith.addf %3, %4 : vector<16x128xf32>
    %c0_6 = arith.constant 0 : index
    %c0_7 = arith.constant 0 : index
    %c0_8 = arith.constant 0 : index
    %6 = vector.load %arg6[%c0_6, %c0_7, %c0_8] : memref<1x16x128xf32, #tpu.memory_space<vmem>>, vector<1x16x128xf32>
    %7 = vector.shape_cast %6 : vector<1x16x128xf32> to vector<16x128xf32>
    %8 = vector.shape_cast %5 : vector<16x128xf32> to vector<1x16x128xf32>
    tpu.vector_store %arg6[%c0_6, %c0_7, %c0_8], %8 {strides = array<i32>} : memref<1x16x128xf32, #tpu.memory_space<vmem>>, vector<1x16x128xf32>,
    return
  }
  func.func @transform_0(%arg0: i32, %arg1: i32, %arg2: i32) -> (i32, i32, i32) {
    %c0_i32 = arith.constant 0 : i32
    %c0_i32_0 = arith.constant 0 : i32
    return %arg0, %arg1, %c0_i32 : i32, i32, i32
  }
  func.func @transform_1(%arg0: i32, %arg1: i32, %arg2: i32) -> (i32, i32) {
    %c0_i32 = arith.constant 0 : i32
    %c0_i32_0 = arith.constant 0 : i32
    return %c0_i32, %arg2 : i32, i32
  }
  func.func @transform_2(%arg0: i32, %arg1: i32, %arg2: i32) -> (i32, i32) {
    %c0_i32 = arith.constant 0 : i32
    return %arg1, %arg2 : i32, i32
  }
  func.func @transform_3(%arg0: i32, %arg1: i32, %arg2: i32) -> (i32, i32, i32) {
    %c0_i32 = arith.constant 0 : i32
    return %arg0, %arg1, %arg2 : i32, i32, i32
  }
}

</mosaic_0001>

<bundles_post_ra>
// kernel: patch_embedding_with_pe.1
= control target key start
LH: loop header
LB: loop body
LE: loop exit
PB: predicated region body
PF: predicated region fallthrough
CT: control target
= control target key end

     0   :  { %8 = vsyncpa [#allocation3], 0  ;;  %s883_s0 = inlined_call_operand.vmem [shape: bf16[2,16,128], index: 0, kind: input, shape index: {}]   ;;  %s884_s1 = inlined_call_operand.vmem [shape: bf16[128,128], index: 1, kind: input, shape index: {}]   ;;  %s885_s2 = inlined_call_operand.vmem [shape: f32[16,128], index: 2, kind: input, shape index: {}]   ;;  %s886_s3 = inlined_call_operand.hbm [shape: f32[2,16,128], index: 3, kind: output, shape index: {}]  }
   0x1   :  { %10 = vsyncpa [#allocation3 + $0x1], 0  ;;  %s738_s12 = smov 0   ;;  %s740_s13 = smov 0  }
   0x2   :  { %s742_s14 = smov 0   ;;  %s744_s15 = smov 0  }
   0x3   :  { %s746_s16 = smov 0   ;;  %s748_s17 = smov 0  }
   0x4 LB: > { %s510_s18 = sadd.s32 4294967295, %s711_s17   ;;  %s511_s19 = sadd.s32 4294967294, %s711_s17   ;;  %s711_s17 = sphi %s748_s17, %s16_s17   ;;  %s707_s16 = sphi %s746_s16, %s893_s16   ;;  %s703_s15 = sphi %s744_s15, %s892_s15   ;;  %s699_s14 = sphi %s742_s14, %s891_s14   ;;  %s695_s13 = sphi %s740_s13, %s890_s13   ;;  %s691_s12 = sphi %s738_s12, %s889_s12  }
   0x5   : > { %s35_s20 = sadd.s32 1, %s707_s16  ;;  %s128_s21 = sadd.s32 1, %s699_s14 }
   0x6   : > { %p37_p0 = scmp.ge.s32.totalorder %s35_s20, 2  ;;  %p138_p1 = scmp.ne.s32.totalorder %s699_s14, %s695_s13 }
   0x7   : > { %p139_p2 = scmp.eq.s32.totalorder %s510_s18, 1  ;;  %p144_p3 = scmp.ne.s32.totalorder %s695_s13, %s691_s12 }
   0x8   : > { %s895_s20 = smov (%p37_p0, %s35_s20), 0  ;;  %p145_p5 = scmp.eq.s32.totalorder %s511_s19, 1 }
   0x9   : > { %p778_p4 = por %p139_p2, %p138_p1  ;;  %s121_s23 = ssub.s32 %s707_s16, %s895_s20 }
   0xa   : > { %p516_p6 = scmp.ge.s32.totalorder %s711_s17, 1  ;;  %p126_p7 = scmp.eq.s32.totalorder %s121_s23, 0 }
   0xb   : > { %p785_p8 = por %p145_p5, %p144_p3  ;;  %p195_p9 = scmp.lt.s32.totalorder %s711_s17, 3 }
   0xc   : > { %s791_s25 = scalar_select %p126_p7, %s699_s14, %s128_s21  }
   0xd   : > { %p196_p10 = pnand %p516_p6, %p195_p9 }
   0xe   : > { %v624_v0 = vld [vmem:[%s884_s1] sm:$0xff] (!%p196_p10)   ;;  %v713_v1 = vmov (!%p196_p10), 0.0   ;;  %v625_v2 = vld [vmem:[%s884_s1 + $0x8] sm:$0xff] (!%p196_p10)   ;;  %vm714_vm0 = vmmov (!%p196_p10), 0   ;;  %p236_p11 = scmp.lt.s32.totalorder (!%p196_p10), %s703_s15, 1  ;;  %v626_v3 = vld [vmem:[%s884_s1 + $0x10] sm:$0xff] (!%p196_p10)  }
   0xf   : > { %199 = sbr.rel (%p196_p10) target bundleno = 278 (0x116), region = 32  ;;  %545 = vmatprep.subr.bf16.mxu0 (!%p196_p10), %v713_v1  ;;  %561 = vmatprep.mubr.msk.bf16.mxu0 (!%p196_p10), %vm714_vm0, %v713_v1  ;;  %v627_v4 = vld [vmem:[%s884_s1 + $0x18] sm:$0xff] (!%p196_p10)   ;;  %v628_v5 = vld [vmem:[%s884_s1 + $0x20] sm:$0xff] (!%p196_p10)   ;;  %v629_v6 = vld [vmem:[%s884_s1 + $0x28] sm:$0xff] (!%p196_p10)   ;;  %s535_s10 = sshll.u32 (!%p196_p10), %s703_s15, 8 }
  0x10   : > { %546 = vmatpush3.bf16.msra.mxu0 (!%p196_p10), %v624_v0  ;;  %v630_v7 = vld [vmem:[%s884_s1 + $0x30] sm:$0xff] (!%p196_p10)   ;;  %v631_v8 = vld [vmem:[%s884_s1 + $0x38] sm:$0xff] (!%p196_p10)   ;;  %v278_v10 = vld [vmem:[%s885_s2] sm:$0xff] (!%p196_p10)  ;;  %s835_s21 = scalar_lea.hbm (!%p196_p10), %s886_s3, %s535_s10  ;;  %s715_s26 = smov (!%p196_p10), [#allocation2]  }
  0x11   : > { %547 = vmatprep.subr.bf16.mxu0 (!%p196_p10), %v713_v1  ;;  %v279_v12 = vld [vmem:[%s885_s2 + $0x8] sm:$0xff] (!%p196_p10)  ;;  %s637_s27 = sshll.u32 (!%p196_p10), %s715_s26, 4  ;;  %s638_s27 = int_to_ptr.vmem [resolvable:$false] %s637_s27 }
  0x12   : > { %s639_s28 = scalar_lea.vmem (!%p196_p10), %s638_s27, 512 }
  0x14   : > { %548 = vmatpush3.bf16.msra.mxu0 (!%p196_p10), %v625_v2 }
  0x15   : > { %549 = vmatprep.subr.bf16.mxu0 (!%p196_p10), %v713_v1 }
  0x16   : > { %s237_s30 = scalar_select %p236_p11, %s703_s15, 1 }
  0x18   : > { %s534_s6 = sshll.u32 %s237_s30, 3  ;;  %550 = vmatpush3.bf16.msra.mxu0 %v626_v3  ;;  %s232_s30 = sand.u32 1, %s695_s13  }
  0x19   : > { %s243_s9 = scalar_lea.vmem %s883_s0, %s534_s6  ;;  %551 = vmatprep.subr.bf16.mxu0 %v713_v1  ;;  %s517_s4 = sshll.u32 %s232_s30, 4 }
  0x1a   : > { %v632_v9 = vld [vmem:[%s243_s9] sm:$0xff]   ;;  %s234_s7 = scalar_lea.vmem [#allocation2], %s517_s4  ;;  %s837_s15 = scalar_lea.sflag [#allocation3], %s232_s30 }
  0x1b   : > { %s394_s8 = sshll.u32 %s234_s7, 4  ;;  %s830_s8 = int_to_ptr.vmem [resolvable:$true] %s394_s8 }
  0x1c   : > { %552 = vmatpush3.bf16.msra.mxu0 %v627_v4  ;;  %s633_s23 = scalar_lea.vmem %s830_s8, 256  ;;  %p640_p1 = scmp.lt.s32.totalorder %s830_s8, %s638_s27 }
  0x1d   : > { %553 = vmatprep.subr.bf16.mxu0 %v713_v1  ;;  %p634_p12 = scmp.ne.s32.totalorder %s830_s8, %s633_s23  ;;  %p641_p2 = scmp.lt.s32.totalorder %s639_s28, %s633_s23 }
  0x1f   : > { %p635_p13 = pnand %p634_p12, %p778_p4  ;;  %p642_p3 = por %p641_p2, %p640_p1 }
  0x20   : > { %554 = vmatpush3.bf16.msra.mxu0 %v628_v5 }
  0x21   : > { %555 = vmatprep.subr.bf16.mxu0 %v713_v1  ;;  %p636_p0 = pneg %p635_p13 }
  0x23   : > { %p643_p5 = pnand %p642_p3, %p636_p0 }
  0x24   : > { %556 = vmatpush3.bf16.msra.mxu0 %v629_v6 }
  0x25   : > { %557 = vmatprep.subr.bf16.mxu0 %v713_v1 }
  0x28   : > { %558 = vmatpush3.bf16.msra.mxu0 %v630_v7 }
  0x29   : > { %559 = vmatprep.subr.bf16.mxu0 %v713_v1 }
  0x2c   : > { %560 = vmatpush3.bf16.msra.mxu0 %v631_v8 }
  0x2f   : > { %562 = vmatmul.mubr.bf16.vlgmr.msra.gmra.mrb[0].mxu0 %v632_v9 }
 0x102   : > { %v368_v11 = vpop.f32.mrb[0].mxu0 }
 0x103   : > { %v369_v13 = vadd.f32 %v368_v11, %v278_v10  ;;  %v563_v14 = vpop.f32.mrb[1].mxu0 }
 0x104   : > { %v371_v15 = vpop.f32.mrb[2].mxu0 }
 0x105   : > { %375 = vst [vmem:[%s234_s7] sm:$0xff] %v369_v13  ;;  %v372_v16 = vadd.f32 %v371_v15, %v279_v12  ;;  %v564_v17 = vpop.f32.mrb[3].mxu0 }
 0x107   : > { %376 = vst [vmem:[%s234_s7 + $0x8] sm:$0xff] %v372_v16 }
 0x108   : > { %646 = shalt.err (!%p643_p5)
}
 0x109   : > { %s647_s29 = scalar_lea.hbm %s835_s21, 256  ;;  %s651_s5 = scalar_lea.hbm %s886_s3, 512 }
 0x10a   : > { %p648_p6 = scmp.ne.s32.totalorder %s835_s21, %s647_s29  ;;  %p652_p10 = scmp.lt.u32.totalorder %s835_s21, %s886_s3 }
 0x10b   : > { %p653_p11 = scmp.lt.u32.totalorder %s651_s5, %s647_s29  ;;  %p655_p13 = scmp.lt.u32.totalorder %s647_s29, %s835_s21 }
 0x10c   : > { %p649_p7 = pnand %p648_p6, %p778_p4 }
 0x10d   : > { %p654_p12 = por %p653_p11, %p652_p10 }
 0x10e   : > { %p650_p9 = pneg %p649_p7 }
 0x10f   : > { %p656_p0 = por %p655_p13, %p654_p12 }
 0x111   : > { %p657_p1 = pnand %p656_p0, %p650_p9 }
 0x113   : > { %660 = shalt.err (!%p657_p1)
}
 0x114   : > { %s716_s10 = smov 128   ;;  %s717_s11 = smov 8  }
 0x115   : > { %565 = dma.vmem_to_hbm [thread:$0]  (%p778_p4), %s830_s8, 256, %s835_s21, %s837_s15, %s716_s10, %s716_s10, %s717_s11  }
 0x116 PF: > { %p571_p2 = scmp.ge.s32.totalorder %s711_s17, 2  ;;  %s409_s18 = sand.u32 1, %s691_s12  }
 0x117   : > { %s410_s9 = scalar_lea.sflag [#allocation3], %s409_s18 }
 0x118   : > { %p568_p3 = pnand %p571_p2, %p785_p8 }
 0x11a   : > { %686 = dma.done.wait (!%p568_p3), %s410_s9, 256  }
 0x11b   : > { %688 = vsyncadd (!%p568_p3), %s410_s9, 4294967040  ;;  %s16_s17 = sadd.s32 1, %s711_s17   ;;  %s889_s12 = smov %s695_s13 }
 0x11c   : > { %p13_p5 = scmp.ge.s32.totalorder %s16_s17, 4   ;;  %s890_s13 = smov %s699_s14 }
 0x11d   : > { %s891_s14 = smov %s791_s25  ;;  %s892_s15 = smov %s707_s16 }
 0x11e   : > { %s893_s16 = smov %s895_s20  ;;  %15 = sbr.rel (!%p13_p5) target bundleno = 4 (0x4), region = 73 }
 0x125   :  { %415 = vsyncpa [#allocation3], 1 }
 0x126   :  { %417 = vsyncpa [#allocation3 + $0x1], 1 }

</bundles_post_ra>
